<compile_context>
chip_gen: v5e
topology: v5e:2x2
jax: 0.10.0
libtpu: 0.0.40
codegen_flags: <defaults>
</compile_context>

<pallas_src>
import functools

import jax
import jax.numpy as jnp
from jax import lax
from jax.experimental import pallas as pl
from jax.experimental.pallas import tpu as pltpu


def _opl_kernel(cnt_ref, feat_ref, lab_col_ref, lab_row_ref, out_ref, *,
                use_bf16_matmul: bool):
    # features: (B, D) in VMEM, original dtype; cast once here.
    f = feat_ref[...].astype(jnp.float32)

    # F.normalize(features, p=2, dim=1): x / max(||x||_2, 1e-12)
    #   ==  x * rsqrt(max(||x||^2, 1e-24))   (sqrt is monotone)
    # rsqrt lowers to the EUP (otherwise-idle slot) and removes a (B,D) divide.
    sumsq = jnp.sum(f * f, axis=1, keepdims=True)
    fn = f * lax.rsqrt(jnp.maximum(sumsq, 1e-24))

    # MXU operands; optional bf16 downcast (f32 accumulation retained).
    operand = fn.astype(jnp.bfloat16) if use_bf16_matmul else fn

    # dot = fn @ fn.T : contract the feature dim of both operands on the MXU.
    dot = lax.dot_general(
        operand, operand, (((1,), (1,)), ((), ())),
        preferred_element_type=jnp.float32)

    # mask = labels[:, None] == labels[None, :]
    mask = lab_col_ref[...] == lab_row_ref[...]          # (B, B) bool

    # Diagonal correction: dot[i, i] == ||operand row i||^2 (f32 accum), so
    # subtracting the exact diagonal sum replaces the eye/iota mask. Valid
    # even if some rows have norm <= eps (then their diag entry is < 1 and we
    # subtract exactly what the matmul produced).
    diag_sum = jnp.sum(jnp.square(operand.astype(jnp.float32)))

    pos_num = jnp.sum(jnp.where(mask, dot, 0.0)) - diag_sum
    neg_num = jnp.sum(jnp.where(mask, 0.0, jnp.abs(dot)))

    # Pair counts depend only on labels; precomputed in the wrapper (SMEM).
    pos_pairs_mean = pos_num / (cnt_ref[0] + 1e-6)
    neg_pairs_mean = neg_num / (cnt_ref[1] + 1e-6)
    loss = 1.0 - pos_pairs_mean + 0.7 * neg_pairs_mean

    # scalar outputs land in SMEM
    out_ref[0] = loss
    out_ref[1] = pos_pairs_mean
    out_ref[2] = neg_pairs_mean


def orthogonal_projection_loss(features, labels, *, use_bf16_matmul=False):
    """features: [B, D] float, labels: [B] int. Returns (loss, pos_mean, neg_mean)."""
    B, D = features.shape
    lab = labels.astype(jnp.int32)
    lab_col = lab.reshape(B, 1)
    lab_row = lab.reshape(1, B)

    # mask_pos.sum() / mask_neg.sum() depend only on labels -> compute them
    # once here (tiny, labels-only work) and pass via SMEM, instead of doing
    # two extra (B, B) cross-lane XLU reductions inside the kernel.
    mask_sum = jnp.sum((lab_col == lab_row).astype(jnp.float32))
    counts = jnp.stack(
        [mask_sum - float(B), float(B * B) - mask_sum]).astype(jnp.float32)

    # Single-block VMEM budget check (v7x is the tightest: 64 MiB physical,
    # 32 MiB scoped default). Rough live set: features (input dtype) + fn f32
    # + ~3 live (B, B) f32 temporaries.
    itemsize = jnp.dtype(features.dtype).itemsize
    est_vmem = B * D * (itemsize + 4) + 4 * B * B * 4
    assert est_vmem < 24 * 1024 * 1024, (
        f"single-block OPL kernel needs ~{est_vmem} B VMEM; "
        "switch to a K-tiled Gram accumulation grid for this size")

    kernel = functools.partial(_opl_kernel, use_bf16_matmul=use_bf16_matmul)
    out = pl.pallas_call(
        kernel,
        out_shape=jax.ShapeDtypeStruct((3,), jnp.float32),
        in_specs=[
            pl.BlockSpec(memory_space=pltpu.SMEM),   # pair counts (2,)
            pl.BlockSpec(memory_space=pltpu.VMEM),   # features, original dtype
            pl.BlockSpec(memory_space=pltpu.VMEM),   # labels column (B, 1)
            pl.BlockSpec(memory_space=pltpu.VMEM),   # labels row    (1, B)
        ],
        out_specs=pl.BlockSpec(memory_space=pltpu.SMEM),
        compiler_params=pltpu.CompilerParams(vmem_limit_bytes=32 * 1024 * 1024),
    )(counts, features, lab_col, lab_row)
    return out[0], out[1], out[2]


def _reference(features, labels):
    f = features.astype(jnp.float32)
    fn = f / jnp.maximum(jnp.linalg.norm(f, axis=1, keepdims=True), 1e-12)
    lab = labels.astype(jnp.int32)
    mask = lab[:, None] == lab[None, :]
    eye = jnp.eye(mask.shape[0], dtype=bool)
    mask_pos = jnp.where(mask & ~eye, 1.0, 0.0)
    mask_neg = jnp.where(~mask, 1.0, 0.0)
    dot = fn @ fn.T
    pos = jnp.sum(mask_pos * dot) / (jnp.sum(mask_pos) + 1e-6)
    neg = jnp.sum(jnp.abs(mask_neg * dot)) / (jnp.sum(mask_neg) + 1e-6)
    return 1.0 - pos + 0.7 * neg, pos, neg


if __name__ == "__main__":
    key = jax.random.PRNGKey(0)
    kf, kl = jax.random.split(key)
    B, D = 8, 32
    features = jax.random.normal(kf, (B, D), dtype=jnp.float32)
    labels = jax.random.randint(kl, (B,), 0, 4, dtype=jnp.int32)

    ref_loss, ref_pos, ref_neg = _reference(features, labels)

    # Default path: f32 operands into the MXU (matches PyTorch numerics).
    loss, pos_mean, neg_mean = orthogonal_projection_loss(features, labels)
    jax.block_until_ready((loss, pos_mean, neg_mean))
    assert jnp.allclose(loss, ref_loss, atol=1e-5), (loss, ref_loss)
    assert jnp.allclose(pos_mean, ref_pos, atol=1e-5), (pos_mean, ref_pos)
    assert jnp.allclose(neg_mean, ref_neg, atol=1e-5), (neg_mean, ref_neg)

    # Optional bf16-MXU path (v6e/v7x native); operands rounded to bf16 with
    # f32 accumulation -> looser tolerance against the f32 reference.
    loss_bf, pos_bf, neg_bf = orthogonal_projection_loss(
        features, labels, use_bf16_matmul=True)
    jax.block_until_ready((loss_bf, pos_bf, neg_bf))
    assert jnp.allclose(loss_bf, ref_loss, atol=2e-2), (loss_bf, ref_loss)
    assert jnp.allclose(pos_bf, ref_pos, atol=2e-2), (pos_bf, ref_pos)
    assert jnp.allclose(neg_bf, ref_neg, atol=2e-2), (neg_bf, ref_neg)

    print("KERNEL_OK")
</pallas_src>

<mosaic_0001>
module attributes {stable_mosaic.version = 11 : i64} {
  func.func @_opl_kernel(%arg0: memref<2xf32, #tpu.memory_space<smem>>, %arg1: memref<8x32xf32, #tpu.memory_space<vmem>>, %arg2: memref<8x1xi32, #tpu.memory_space<vmem>>, %arg3: memref<1x8xi32, #tpu.memory_space<vmem>>, %arg4: memref<3xf32, #tpu.memory_space<smem>>) attributes {dimension_semantics = [], scalar_prefetch = 0 : i64, scratch_operands = 0 : i64, tpu.core_type = #tpu.core_type<tc>} {
    %c0 = arith.constant 0 : index
    %c0_0 = arith.constant 0 : index
    %0 = vector.load %arg1[%c0, %c0_0] : memref<8x32xf32, #tpu.memory_space<vmem>>, vector<8x32xf32>
    %1 = arith.mulf %0, %0 : vector<8x32xf32>
    %cst = arith.constant dense<0.000000e+00> : vector<8xf32>
    %2 = vector.multi_reduction <add>, %1, %cst [1] : vector<8x32xf32> to vector<8xf32>
    %3 = vector.shape_cast %2 : vector<8xf32> to vector<8x1xf32>
    %cst_1 = arith.constant 1.000000e-24 : f32
    %4 = vector.broadcast %cst_1 : f32 to vector<8x1xf32>
    %5 = arith.maximumf %3, %4 : vector<8x1xf32>
    %6 = math.rsqrt %5 : vector<8x1xf32>
    %7 = vector.broadcast %6 : vector<8x1xf32> to vector<8x32xf32>
    %8 = arith.mulf %0, %7 : vector<8x32xf32>
    %cst_2 = arith.constant dense<0.000000e+00> : vector<8x8xf32>
    %9 = tpu.matmul %8, %8, %cst_2 {dimension_numbers = #tpu.dot_dimension_numbers<[1], [1], [0], [0], [0, 0, 1, 0], [], []>} : vector<8x32xf32>, vector<8x32xf32>, vector<8x8xf32> -> vector<8x8xf32>
    %c0_3 = arith.constant 0 : index
    %c0_4 = arith.constant 0 : index
    %10 = vector.load %arg2[%c0_3, %c0_4] : memref<8x1xi32, #tpu.memory_space<vmem>>, vector<8x1xi32>
    %c0_5 = arith.constant 0 : index
    %c0_6 = arith.constant 0 : index
    %11 = vector.load %arg3[%c0_5, %c0_6] : memref<1x8xi32, #tpu.memory_space<vmem>>, vector<1x8xi32>
    %12 = vector.broadcast %10 : vector<8x1xi32> to vector<8x8xi32>
    %13 = vector.broadcast %11 : vector<1x8xi32> to vector<8x8xi32>
    %14 = arith.cmpi eq, %12, %13 : vector<8x8xi32>
    %15 = arith.mulf %8, %8 : vector<8x32xf32>
    %16 = vector.shape_cast %15 : vector<8x32xf32> to vector<1x8x32xf32>
    %cst_7 = arith.constant dense<0.000000e+00> : vector<1xf32>
    %17 = vector.multi_reduction <add>, %16, %cst_7 [1, 2] : vector<1x8x32xf32> to vector<1xf32>
    %18 = vector.shape_cast %17 : vector<1xf32> to vector<1x1x1xf32>
    %19 = vector.extract %18[0, 0, 0] : f32 from vector<1x1x1xf32>
    %cst_8 = arith.constant 0.000000e+00 : f32
    %20 = vector.broadcast %cst_8 : f32 to vector<8x8xf32>
    %21 = arith.select %14, %9, %20 : vector<8x8xi1>, vector<8x8xf32>
    %22 = vector.shape_cast %21 : vector<8x8xf32> to vector<1x8x8xf32>
    %cst_9 = arith.constant dense<0.000000e+00> : vector<1xf32>
    %23 = vector.multi_reduction <add>, %22, %cst_9 [1, 2] : vector<1x8x8xf32> to vector<1xf32>
    %24 = vector.shape_cast %23 : vector<1xf32> to vector<1x1x1xf32>
    %25 = vector.extract %24[0, 0, 0] : f32 from vector<1x1x1xf32>
    %26 = arith.subf %25, %19 : f32
    %27 = math.absf %9 : vector<8x8xf32>
    %cst_10 = arith.constant 0.000000e+00 : f32
    %28 = vector.broadcast %cst_10 : f32 to vector<8x8xf32>
    %29 = arith.select %14, %28, %27 : vector<8x8xi1>, vector<8x8xf32>
    %30 = vector.shape_cast %29 : vector<8x8xf32> to vector<1x8x8xf32>
    %cst_11 = arith.constant dense<0.000000e+00> : vector<1xf32>
    %31 = vector.multi_reduction <add>, %30, %cst_11 [1, 2] : vector<1x8x8xf32> to vector<1xf32>
    %32 = vector.shape_cast %31 : vector<1xf32> to vector<1x1x1xf32>
    %33 = vector.extract %32[0, 0, 0] : f32 from vector<1x1x1xf32>
    %c0_12 = arith.constant 0 : index
    %34 = memref.load %arg0[%c0_12] : memref<2xf32, #tpu.memory_space<smem>>
    %cst_13 = arith.constant 9.99999997E-7 : f32
    %35 = arith.addf %34, %cst_13 : f32
    %36 = arith.divf %26, %35 : f32
    %c1 = arith.constant 1 : index
    %37 = memref.load %arg0[%c1] : memref<2xf32, #tpu.memory_space<smem>>
    %cst_14 = arith.constant 9.99999997E-7 : f32
    %38 = arith.addf %37, %cst_14 : f32
    %39 = arith.divf %33, %38 : f32
    %cst_15 = arith.constant 1.000000e+00 : f32
    %40 = arith.subf %cst_15, %36 : f32
    %cst_16 = arith.constant 0.699999988 : f32
    %41 = arith.mulf %cst_16, %39 : f32
    %42 = arith.addf %40, %41 : f32
    %c0_17 = arith.constant 0 : index
    %43 = memref.load %arg4[%c0_17] : memref<3xf32, #tpu.memory_space<smem>>
    memref.store %42, %arg4[%c0_17] : memref<3xf32, #tpu.memory_space<smem>>
    %c1_18 = arith.constant 1 : index
    %44 = memref.load %arg4[%c1_18] : memref<3xf32, #tpu.memory_space<smem>>
    memref.store %36, %arg4[%c1_18] : memref<3xf32, #tpu.memory_space<smem>>
    %c2 = arith.constant 2 : index
    %45 = memref.load %arg4[%c2] : memref<3xf32, #tpu.memory_space<smem>>
    memref.store %39, %arg4[%c2] : memref<3xf32, #tpu.memory_space<smem>>
    return
  }
}

</mosaic_0001>

<bundles_post_ra>
// kernel: tpu_custom_call.1
= control target key start
LH: loop header
LB: loop body
LE: loop exit
PB: predicated region body
PF: predicated region fallthrough
CT: control target
= control target key end

     0   :  { %9 = vsyncpa [#allocation4], 0  ;;  %s283_s0 = inlined_call_operand.vmem [shape: f32[2], index: 0, kind: input, shape index: {}]   ;;  %s284_s1 = inlined_call_operand.vmem [shape: f32[8,32], index: 1, kind: input, shape index: {}]   ;;  %s285_s2 = inlined_call_operand.vmem [shape: s32[8,1], index: 2, kind: input, shape index: {}]   ;;  %s286_s3 = inlined_call_operand.vmem [shape: s32[1,8], index: 3, kind: input, shape index: {}]   ;;  %s287_s4 = inlined_call_operand.hbm [shape: f32[3], index: 4, kind: output, shape index: {}]  }
   0x1   :  { %10 = vsyncpa [#allocation3], 0  ;;  %s16_s17 = sshll.u32 %s283_s0, 4  ;;  %s230_s18 = smov [#allocation2]   ;;  %s17_s17 = int_to_ptr.vmem [resolvable:$true] %s16_s17 }
   0x2   :  { %19 = dma.vmem_to_smem %s17_s17, 16, %s230_s18, [#allocation4]  }
   0x3   :  { %226 = dma.done.wait [#allocation4], 16  }
   0x4   :  { %227 = vsyncadd [#allocation4], 4294967280 }
   0x5   :  { %30 = sfence }
   0x6   :  { %v31_v0 = vld [vmem:[%s284_s1] sm:$0xff]  ;;  %vm33_vm0 = vcmask 261120   ;;  %v231_v4 = vmov 0   ;;  %vm91_vm5 = vcmask 64512   ;;  %s180_s23 = sld [smem:[#allocation2 + $0x1]]  ;;  %s167_s10 = sshll.u32 %s287_s4, 4  ;;  %s168_s10 = int_to_ptr.hbm [resolvable:$true] %s167_s10 }
   0x7   :  { %v32_v1 = vmul.f32 %v31_v0, %v31_v0  ;;  %v72_v3 = vld [vmem:[%s285_s2] sm:$0xff]  ;;  %194 = vset.pattern.permute.xlu0 %v231_v4  ;;  %s115_s2 = sld [smem:[#allocation2]]  ;;  %s232_s13 = smov [#allocation5]  }
   0x8   :  { %v195_v20 = vld [vmem:[%s286_s3] ss:$0 sm:$0xff] }
   0x9   :  { %v34_v2 = vsel %vm33_vm0, %v32_v1, 0.0 }
   0xa   :  { %35 = vadd.xlane.f32.xlu0 %v34_v2 }
   0xc   :  { %s135_s3 = sadd.f32 1e-06, %s180_s23 }
   0xd   :  { %s116_s24 = sadd.f32 1e-06, %s115_s2 }
   0xe   :  { %v136_v33 = vstv %s135_s3 }
   0xf   :  { %v117_v32 = vstv %s116_s24  ;;  %vm142_vm8 = vweird.f32 %v136_v33  ;;  %v148_v52 = vand.u32 2147483648, %v136_v33  ;;  %v146_v57 = vand.u32 2147483647, %v136_v33 }
  0x10   :  { %vm123_vm6 = vweird.f32 %v117_v32  ;;  %v129_v47 = vand.u32 2147483648, %v117_v32  ;;  %v127_v51 = vand.u32 2147483647, %v117_v32 }
  0x11   :  { %v149_v62 = vor.u32 1.1754944e-38, %v148_v52  ;;  %vm147_vm13 = vcmp.eq.f32.partialorder %v146_v57, 8.507059e+37 }
  0x12   :  { %v130_v60 = vor.u32 1.1754944e-38, %v129_v47  ;;  %vm128_vm12 = vcmp.eq.f32.partialorder %v127_v51, 8.507059e+37 }
  0x1e   :  { %75 = vperm.xlu0 %194, %v72_v3  }
  0x7d   :  { %v36_v5 = vpop.xlane.xlu0 %35 }
  0x7e   :  { %v37_v6 = vmax.f32 %v36_v5, 1e-24 }
  0x80   :  { %196 = vrsqrt.f32 %v37_v6  ;;  %vm44_vm2 = vweird.f32 %v37_v6 }
  0x81   :  { %198 = vrcp.f32 %v117_v32 }
  0x82   :  { %200 = vrcp.f32 %v136_v33 }
  0x86   :  { %v197_v7 = vpop.eup %196 }
  0x87   :  { %v39_v8 = vmul.f32 %v197_v7, %v37_v6  ;;  %vm45_vm1 = vweird.f32 %v197_v7  ;;  %v199_v34 = vpop.eup %198 }
  0x88   :  { %vm46_vm3 = vmor %vm44_vm2, %vm45_vm1  ;;  %v201_v35 = vpop.eup %200  ;;  %v119_v36 = vmul.f32 %v199_v34, %v117_v32  ;;  %vm124_vm7 = vweird.f32 %v199_v34 }
  0x89   :  { %v40_v9 = vmul.f32 %v197_v7, %v39_v8  ;;  %v138_v37 = vmul.f32 %v201_v35, %v136_v33  ;;  %vm143_vm9 = vweird.f32 %v201_v35  ;;  %vm274_vm10 = vmor %vm123_vm6, %vm124_vm7 }
  0x8a   :  { %v120_v38 = vsub.f32 1.0, %v119_v36  ;;  %vm144_vm11 = vmor %vm142_vm8, %vm143_vm9 }
  0x8b   :  { %v41_v10 = vmul.f32 0.5, %v40_v9  ;;  %v139_v39 = vsub.f32 1.0, %v138_v37 }
  0x8c   :  { %v121_v43 = vmul.f32 %v199_v34, %v120_v38 }
  0x8d   :  { %v42_v11 = vsub.f32 1.5, %v41_v10  ;;  %v140_v46 = vmul.f32 %v201_v35, %v139_v39 }
  0x8e   :  { %v122_v50 = vadd.f32 %v199_v34, %v121_v43 }
  0x8f   :  { %v43_v12 = vmul.f32 %v197_v7, %v42_v11  ;;  %v141_v56 = vadd.f32 %v201_v35, %v140_v46 }
  0x90   :  { %v76_v22 = vpop.permute.xlu0 %75  ;;  %v126_v61 = vsel %vm274_vm10, %v199_v34, %v122_v50 }
  0x91   :  { %v47_v13 = vsel %vm46_vm3, %v197_v7, %v43_v12  ;;  %vm78_vm4 = vcmp.eq.s32.totalorder %v76_v22, %v195_v20  ;;  %v145_v1 = vsel %vm144_vm11, %v201_v35, %v141_v56  ;;  %v131_v3 = vsel %vm128_vm12, %v130_v60, %v126_v61 }
  0x92   :  { %v48_v14 = vmul.f32 %v47_v13, %v31_v0  ;;  %v150_v4 = vsel %vm147_vm13, %v149_v62, %v145_v1 }
  0x94   :  { %178 = vmatpush.xpose.msk.msra.mxu0 %vm33_vm0, %v48_v14  ;;  %v79_v15 = vmul.f32 %v48_v14, %v48_v14 }
  0x96   :  { %v80_v16 = vsel %vm33_vm0, %v79_v15, 0.0 }
  0x97   :  { %81 = vadd.xlane.f32.xlu1 %v80_v16  ;;  %179 = vmatmul.msk.f32.vlgmr.msra.gmra.mxu0 %vm33_vm0, %v48_v14 }
 0x10a   :  { %v82_v17 = vpop.xlane.xlu1 %81 }
 0x10b   :  { %v83_v18 = vrot.slane %v82_v17, 4 }
 0x10d   :  { %v84_v19 = vadd.f32 %v83_v18, %v82_v17 }
 0x10f   :  { %v85_v21 = vrot.slane %v84_v19, 2 }
 0x111   :  { %v86_v23 = vadd.f32 %v85_v21, %v84_v19 }
 0x113   :  { %v87_v24 = vrot.slane %v86_v23, 1 }
 0x114   :  { %v69_v25 = vpop.f32.mrf.mxu0 }
 0x115   :  { %v90_v26 = vsel %vm78_vm4, %v69_v25, 0.0  ;;  %v103_v27 = vand.u32 2147483647, %v69_v25  ;;  %v88_v28 = vadd.f32 %v87_v24, %v86_v23 }
 0x116   :  { %v92_v29 = vsel %vm91_vm5, %v90_v26, 0.0 }
 0x117   :  { %181 = vpush %v88_v28  ;;  %93 = vadd.xlane.f32.xlu1 %v92_v29  ;;  %v104_v30 = vsel %vm78_vm4, 0.0, %v103_v27 }
 0x118   :  { %v105_v31 = vsel %vm91_vm5, %v104_v30, 0.0 }
 0x119   :  { %106 = vadd.xlane.f32.xlu2 %v105_v31 }
 0x148   :  { %s182_s25 = spop %181 }
 0x18a   :  { %v94_v40 = vpop.xlane.xlu1 %93 }
 0x18b   :  { %v95_v41 = vrot.slane %v94_v40, 4 }
 0x18c   :  { %v107_v42 = vpop.xlane.xlu2 %106 }
 0x18d   :  { %v96_v44 = vadd.f32 %v95_v41, %v94_v40  ;;  %v108_v45 = vrot.slane %v107_v42, 4 }
 0x18f   :  { %v97_v48 = vrot.slane %v96_v44, 2  ;;  %v109_v49 = vadd.f32 %v108_v45, %v107_v42 }
 0x191   :  { %v98_v53 = vadd.f32 %v97_v48, %v96_v44  ;;  %v110_v54 = vrot.slane %v109_v49, 2 }
 0x193   :  { %v111_v58 = vadd.f32 %v110_v54, %v109_v49  ;;  %v99_v59 = vrot.slane %v98_v53, 1 }
 0x195   :  { %v100_v63 = vadd.f32 %v99_v59, %v98_v53  ;;  %v112_v0 = vrot.slane %v111_v58, 1 }
 0x197   :  { %183 = vpush %v100_v63  ;;  %v113_v2 = vadd.f32 %v112_v0, %v111_v58 }
 0x199   :  { %185 = vpush %v113_v2 }
 0x19a   :  { %187 = vpush %v131_v3 }
 0x19b   :  { %189 = vpush %v150_v4 }
 0x1c8   :  { %s184_s26 = spop %183 }
 0x1c9   :  { %s102_s27 = ssub.f32 %s184_s26, %s182_s25 }
 0x1ca   :  { %s186_s28 = spop %185 }
 0x1cb   :  { %s188_s29 = spop %187 }
 0x1cc   :  { %s133_s30 = smul.f32 %s188_s29, %s102_s27  ;;  %s190_s5 = spop %189 }
 0x1cd   :  { %s152_s6 = smul.f32 %s190_s5, %s186_s28 }
 0x1ce   :  { %s153_s7 = ssub.f32 1.0, %s133_s30 }
 0x1cf   :  { %159 = sst [smem:[#allocation5 + $0x1]] %s133_s30  ;;  %s154_s11 = smul.f32 0.7, %s152_s6 }
 0x1d0   :  { %161 = sst [smem:[#allocation5 + $0x2]] %s152_s6 }
 0x1d1   :  { %s155_s12 = sadd.f32 %s154_s11, %s153_s7 }
 0x1d3   :  { %157 = sst [smem:[#allocation5]] %s155_s12 }
 0x1d4   :  { %170 = dma.smem_to_hbm %s232_s13, 16, %s168_s10, [#allocation3]  }
 0x1d5   :  { %228 = dma.done.wait [#allocation3], 16  }
 0x1d6   :  { %229 = vsyncadd [#allocation3], 4294967280 }
 0x1d7   :  { %175 = sfence }
 0x1d8   :  { %176 = vsyncpa [#allocation3], 1 }
 0x1d9   :  { %177 = vsyncpa [#allocation4], 1 }

</bundles_post_ra>
